<compile_context>
chip_gen: v7x
topology: tpu7x:2x2x1
jax: 0.10.0
libtpu: 0.0.40
codegen_flags: <defaults>
</compile_context>

<pallas_src>
import functools

import jax
import jax.numpy as jnp
from jax.experimental import pallas as pl
from jax.experimental.pallas import tpu as pltpu

# ALPHA is a module-level constant in the original losses.py (not shown in the
# snippet). Fix it deterministically here.
ALPHA = 0.5
EPSILON = 1e-8

_TR_CAP = 512     # max rows per block
_TL_CAP = 8192    # max lane tile when a full row does not fit the VMEM budget


def _round_up(x, m):
    return ((x + m - 1) // m) * m


def _round_down(x, m):
    return (x // m) * m


def _vmem_config():
    """Generation-aware VMEM budgets (v7x: 64 MiB physical, v5e/v6e: 128 MiB)."""
    vmem_total = None
    try:
        info = pltpu.get_tpu_info()
        for name in ("vmem_capacity_bytes", "vmem_size_bytes", "vmem_bytes"):
            v = getattr(info, name, None)
            if v:
                vmem_total = int(v)
                break
    except Exception:
        pass
    if not vmem_total:
        vmem_total = 64 * 1024 * 1024          # conservative v7x floor
    # Budget for the double-buffered input tiles (2 inputs x 2 buffers) and the
    # scoped-VMEM limit handed to Mosaic (headroom for outputs/scratch/spills).
    input_budget = min((vmem_total * 5) // 8, 64 * 1024 * 1024)
    vmem_limit = min((vmem_total * 3) // 4, input_budget + 32 * 1024 * 1024)
    return input_budget, vmem_limit


def _select_tiles(R, L, itemsize, input_budget):
    """Pick (TR, TL): grow TL to the full row first, then grow TR."""

    def fits(tr, tl):
        # 2 inputs x 2 pipeline buffers, padded to the (8, 128) VMEM layout.
        return 4 * _round_up(tr, 8) * _round_up(tl, 128) * itemsize <= input_budget

    # Row-block candidates, largest first: the full R (if <= cap), then
    # multiples of 8 down to 8.  A TR < R must be a multiple of 8; TR = R may
    # be anything (full-extent block).
    tr_cands = []
    if R <= _TR_CAP:
        tr_cands.append(R)
    tr_cands += [t for t in range(_round_down(min(R, _TR_CAP), 8), 0, -8)
                 if t != R]
    if not tr_cands:
        tr_cands = [R]
    tr_min = tr_cands[-1]

    if fits(tr_min, L):
        TL = L                  # full row: contiguous DMA, no ragged masking
    else:
        TL = max(min(_round_down(L, 128), _TL_CAP), 128)
        while TL > 128 and not fits(tr_min, TL):
            TL = max(_round_down(TL // 2, 128), 128)

    TR = tr_min
    for t in tr_cands:          # largest row block that still fits the budget
        if fits(t, TL):
            TR = t
            break

    # Megacore: prefer >= 2 row blocks so the "parallel" row axis can shard
    # across v7x's two TensorCores, as long as each input tile stays >= 1 MiB
    # (near the HBM roofline on every generation).
    if TR == R and R >= 16:
        half = _round_up(-(-R // 2), 8)
        if _round_up(half, 8) * _round_up(TL, 128) * itemsize >= (1 << 20):
            TR = half
    # TODO(synk): for tiny R with very large L, split the L range across the
    # two v7x TensorCores and combine partial moments in the JAX epilogue.
    return TR, TL


def _loss_kernel(pred_ref, targ_ref,                       # inputs  (TR, TL)
                 out_ref,                                  # output  (TR, 2)
                 sp_ref, st_ref, spp_ref, stt_ref, spt_ref,  # scratch (TR, 1)
                 *, L, TL, mask_l):
    l = pl.program_id(1)
    nl = pl.num_programs(1)

    # --- init per-row accumulators on the first L tile ---------------------
    @pl.when(l == 0)
    def _init():
        z = jnp.zeros_like(sp_ref)
        sp_ref[...] = z
        st_ref[...] = z
        spp_ref[...] = z
        stt_ref[...] = z
        spt_ref[...] = z

    # --- per-tile streaming moment accumulation -----------------------------
    p = pred_ref[...].astype(jnp.float32)
    t = targ_ref[...].astype(jnp.float32)

    def _accumulate(pv, tv):
        sp_ref[...] += jnp.sum(pv, axis=-1, keepdims=True)
        st_ref[...] += jnp.sum(tv, axis=-1, keepdims=True)
        spp_ref[...] += jnp.sum(pv * pv, axis=-1, keepdims=True)
        stt_ref[...] += jnp.sum(tv * tv, axis=-1, keepdims=True)
        spt_ref[...] += jnp.sum(pv * tv, axis=-1, keepdims=True)

    if mask_l:
        # Only the last L tile is ragged; interior tiles take the cheap
        # unmasked path (no iota/compare/select on every step).
        @pl.when(l < nl - 1)
        def _interior():
            _accumulate(p, t)

        @pl.when(l == nl - 1)
        def _ragged():
            col = l * TL + jax.lax.broadcasted_iota(jnp.int32, p.shape, 1)
            ok = col < L
            _accumulate(jnp.where(ok, p, 0.0), jnp.where(ok, t, 0.0))
    else:
        _accumulate(p, t)

    # --- finalize on the last L tile ----------------------------------------
    @pl.when(l == nl - 1)
    def _finalize():
        inv_L = jnp.float32(1.0 / L)
        sp = sp_ref[...]
        st = st_ref[...]
        spp = spp_ref[...]
        stt = stt_ref[...]
        spt = spt_ref[...]
        cov = spt - sp * st * inv_L
        # Clamp to 0: one-pass moments can go slightly negative for constant
        # rows; matches the centered form where variance >= 0.
        var_x = jnp.maximum(spp - sp * sp * inv_L, 0.0)
        var_y = jnp.maximum(stt - st * st * inv_L, 0.0)
        denom = jnp.sqrt(var_x) * jnp.sqrt(var_y) + EPSILON
        # Zero-variance guard: prevents cov/EPSILON spikes for degenerate
        # (constant) rows under one-pass rounding; identical for normal rows.
        corr = jnp.where(var_x * var_y > 0.0, cov / denom, 0.0)
        # sum((p - t)^2) = spp + stt - 2*spt (removes the streamed d^2 path).
        # TODO(synk): if pred ~= target very closely (late training), restore a
        # streamed d^2 accumulator to avoid cancellation in this difference.
        d2 = jnp.maximum(spp + stt - 2.0 * spt, 0.0)
        lane = jax.lax.broadcasted_iota(jnp.int32, out_ref.shape, 1)
        out_ref[...] = jnp.where(lane == 0, corr, d2)   # (TR, 2): [corr, d2]


def combined_correlation_loss(pred, target, tile_override=None):
    """pred, target: (B, C, H, W) arrays. Returns scalar loss (float32)."""
    B, C, H, W = pred.shape
    R = B * C
    L = H * W

    # Contiguous reshape only (no copy, no dtype cast -- cast happens in-kernel).
    p2 = pred.reshape(R, L)
    t2 = target.reshape(R, L)

    itemsize = jnp.dtype(pred.dtype).itemsize
    input_budget, vmem_limit = _vmem_config()
    if tile_override is not None:
        TR, TL = tile_override
    else:
        TR, TL = _select_tiles(R, L, itemsize, input_budget)
    grid = (pl.cdiv(R, TR), pl.cdiv(L, TL))
    mask_l = (TL != L) and (L % TL != 0)

    kernel = functools.partial(_loss_kernel, L=L, TL=TL, mask_l=mask_l)

    cost = pl.CostEstimate(
        flops=9 * R * L,                  # 3 mul + 5-6 add per element
        transcendentals=2 * R,            # two sqrt per row (finalize)
        bytes_accessed=2 * R * L * itemsize + R * 2 * 4,
    )

    out = pl.pallas_call(
        kernel,
        out_shape=jax.ShapeDtypeStruct((R, 2), jnp.float32),
        grid_spec=pltpu.PrefetchScalarGridSpec(
            num_scalar_prefetch=0,
            grid=grid,
            in_specs=[
                pl.BlockSpec((TR, TL), lambda r, l: (r, l)),
                pl.BlockSpec((TR, TL), lambda r, l: (r, l)),
            ],
            out_specs=pl.BlockSpec((TR, 2), lambda r, l: (r, 0)),
            scratch_shapes=[pltpu.VMEM((TR, 1), jnp.float32)] * 5,
        ),
        compiler_params=pltpu.CompilerParams(
            dimension_semantics=("parallel", "arbitrary"),
            vmem_limit_bytes=vmem_limit,
        ),
        cost_estimate=cost,
    )(p2, t2)

    # Tiny (R, 2)-sized epilogue in plain JAX.
    corr_mean = jnp.sum(out[:, 0]) / jnp.float32(R)
    mse = jnp.sum(out[:, 1]) / jnp.float32(R * L)
    corr_loss = 1.0 - corr_mean
    # Mirror `if corr_loss < 1e-08: corr_loss = 0`
    corr_loss = jnp.where(corr_loss < EPSILON, 0.0, corr_loss)
    return ALPHA * 10.0 * corr_loss + (1.0 - ALPHA) * mse


def _reference_loss(pred, target):
    """Pure-JAX reference mirroring the PyTorch module (centered two-pass)."""
    B, C = pred.shape[0], pred.shape[1]
    p = pred.reshape(B, C, -1).astype(jnp.float32)
    t = target.reshape(B, C, -1).astype(jnp.float32)
    mse = jnp.mean((p - t) ** 2)
    p_c = p - p.mean(axis=-1, keepdims=True)
    t_c = t - t.mean(axis=-1, keepdims=True)
    cov = jnp.sum(p_c * t_c, axis=-1)
    xv = jnp.sqrt(jnp.sum(p_c ** 2, axis=-1))
    yv = jnp.sqrt(jnp.sum(t_c ** 2, axis=-1))
    corr = jnp.mean(cov / (xv * yv + EPSILON))
    corr_loss = 1.0 - corr
    corr_loss = jnp.where(corr_loss < EPSILON, 0.0, corr_loss)
    return ALPHA * 10.0 * corr_loss + (1.0 - ALPHA) * mse


if __name__ == "__main__":
    key = jax.random.PRNGKey(0)
    k1, k2, k3, k4, k5, k6 = jax.random.split(key, 6)

    # Primary test: the module's implied shape (B, C, H, W) = (2, 4, 16, 16).
    pred = jax.random.normal(k1, (2, 4, 16, 16), dtype=jnp.float32)
    # Correlated-but-noisy target so the correlation term is nontrivial.
    target = pred * 0.8 + 0.3 * jax.random.normal(k2, (2, 4, 16, 16), dtype=jnp.float32)
    loss = jax.block_until_ready(combined_correlation_loss(pred, target))
    ref = jax.block_until_ready(_reference_loss(pred, target))
    assert jnp.allclose(loss, ref, rtol=1e-5, atol=1e-5), (loss, ref)

    # Second small test with non-power-of-two dims (full-extent blocks).
    pred2 = jax.random.normal(k3, (2, 3, 10, 12), dtype=jnp.float32)
    target2 = pred2 * 0.5 + 0.4 * jax.random.normal(k4, (2, 3, 10, 12), dtype=jnp.float32)
    loss2 = jax.block_until_ready(combined_correlation_loss(pred2, target2))
    ref2 = jax.block_until_ready(_reference_loss(pred2, target2))
    assert jnp.allclose(loss2, ref2, rtol=1e-5, atol=1e-5), (loss2, ref2)

    # Third small test: force tiny tiles to exercise the multi-tile streaming
    # path, row tiling, and the ragged last-L-tile masking branch.
    pred3 = jax.random.normal(k5, (2, 8, 20, 20), dtype=jnp.float32)
    target3 = pred3 * 0.7 + 0.5 * jax.random.normal(k6, (2, 8, 20, 20), dtype=jnp.float32)
    loss3 = jax.block_until_ready(
        combined_correlation_loss(pred3, target3, tile_override=(8, 128)))
    ref3 = jax.block_until_ready(_reference_loss(pred3, target3))
    assert jnp.allclose(loss3, ref3, rtol=1e-5, atol=1e-5), (loss3, ref3)

    print("KERNEL_OK")
</pallas_src>

<mosaic_0001>
module attributes {stable_mosaic.version = 11 : i64} {
  func.func @_loss_kernel(%arg0: i32, %arg1: i32, %arg2: memref<8x256xf32, #tpu.memory_space<vmem>>, %arg3: memref<8x256xf32, #tpu.memory_space<vmem>>, %arg4: memref<8x2xf32, #tpu.memory_space<vmem>>, %arg5: memref<8x1xf32, #tpu.memory_space<vmem>>, %arg6: memref<8x1xf32, #tpu.memory_space<vmem>>, %arg7: memref<8x1xf32, #tpu.memory_space<vmem>>, %arg8: memref<8x1xf32, #tpu.memory_space<vmem>>, %arg9: memref<8x1xf32, #tpu.memory_space<vmem>>) attributes {dimension_semantics = [#tpu.dimension_semantics<parallel>, #tpu.dimension_semantics<arbitrary>], iteration_bounds = array<i64: 1, 1>, scalar_prefetch = 0 : i64, scratch_operands = 5 : i64, tpu.core_type = #tpu.core_type<tc>, window_params = [{transform_indices = @transform_0, window_bounds = array<i64: 8, 256>}, {transform_indices = @transform_1, window_bounds = array<i64: 8, 256>}, {transform_indices = @transform_2, window_bounds = array<i64: 8, 2>}]} {
    %c0_i32 = arith.constant 0 : i32
    %0 = arith.cmpi eq, %arg1, %c0_i32 : i32
    %1 = arith.extui %0 : i1 to i32
    %c0_i32_0 = arith.constant 0 : i32
    %2 = arith.cmpi ne, %1, %c0_i32_0 : i32
    scf.if %2 {
      %cst_30 = arith.constant 0.000000e+00 : f32
      %36 = vector.broadcast %cst_30 : f32 to vector<8x1xf32>
      %c0_31 = arith.constant 0 : index
      %c0_32 = arith.constant 0 : index
      %37 = vector.load %arg5[%c0_31, %c0_32] : memref<8x1xf32, #tpu.memory_space<vmem>>, vector<8x1xf32>
      tpu.vector_store %arg5[%c0_31, %c0_32], %36 {strides = array<i32>} : memref<8x1xf32, #tpu.memory_space<vmem>>, vector<8x1xf32>,
      %c0_33 = arith.constant 0 : index
      %c0_34 = arith.constant 0 : index
      %38 = vector.load %arg6[%c0_33, %c0_34] : memref<8x1xf32, #tpu.memory_space<vmem>>, vector<8x1xf32>
      tpu.vector_store %arg6[%c0_33, %c0_34], %36 {strides = array<i32>} : memref<8x1xf32, #tpu.memory_space<vmem>>, vector<8x1xf32>,
      %c0_35 = arith.constant 0 : index
      %c0_36 = arith.constant 0 : index
      %39 = vector.load %arg7[%c0_35, %c0_36] : memref<8x1xf32, #tpu.memory_space<vmem>>, vector<8x1xf32>
      tpu.vector_store %arg7[%c0_35, %c0_36], %36 {strides = array<i32>} : memref<8x1xf32, #tpu.memory_space<vmem>>, vector<8x1xf32>,
      %c0_37 = arith.constant 0 : index
      %c0_38 = arith.constant 0 : index
      %40 = vector.load %arg8[%c0_37, %c0_38] : memref<8x1xf32, #tpu.memory_space<vmem>>, vector<8x1xf32>
      tpu.vector_store %arg8[%c0_37, %c0_38], %36 {strides = array<i32>} : memref<8x1xf32, #tpu.memory_space<vmem>>, vector<8x1xf32>,
      %c0_39 = arith.constant 0 : index
      %c0_40 = arith.constant 0 : index
      %41 = vector.load %arg9[%c0_39, %c0_40] : memref<8x1xf32, #tpu.memory_space<vmem>>, vector<8x1xf32>
      tpu.vector_store %arg9[%c0_39, %c0_40], %36 {strides = array<i32>} : memref<8x1xf32, #tpu.memory_space<vmem>>, vector<8x1xf32>,
    } else {
    }
    %c0 = arith.constant 0 : index
    %c0_1 = arith.constant 0 : index
    %3 = vector.load %arg2[%c0, %c0_1] : memref<8x256xf32, #tpu.memory_space<vmem>>, vector<8x256xf32>
    %c0_2 = arith.constant 0 : index
    %c0_3 = arith.constant 0 : index
    %4 = vector.load %arg3[%c0_2, %c0_3] : memref<8x256xf32, #tpu.memory_space<vmem>>, vector<8x256xf32>
    %c0_4 = arith.constant 0 : index
    %c0_5 = arith.constant 0 : index
    %5 = vector.load %arg5[%c0_4, %c0_5] : memref<8x1xf32, #tpu.memory_space<vmem>>, vector<8x1xf32>
    %cst = arith.constant dense<0.000000e+00> : vector<8xf32>
    %6 = vector.multi_reduction <add>, %3, %cst [1] : vector<8x256xf32> to vector<8xf32>
    %7 = vector.shape_cast %6 : vector<8xf32> to vector<8x1xf32>
    %8 = arith.addf %5, %7 : vector<8x1xf32>
    %c0_6 = arith.constant 0 : index
    %c0_7 = arith.constant 0 : index
    %9 = vector.load %arg5[%c0_6, %c0_7] : memref<8x1xf32, #tpu.memory_space<vmem>>, vector<8x1xf32>
    tpu.vector_store %arg5[%c0_6, %c0_7], %8 {strides = array<i32>} : memref<8x1xf32, #tpu.memory_space<vmem>>, vector<8x1xf32>,
    %c0_8 = arith.constant 0 : index
    %c0_9 = arith.constant 0 : index
    %10 = vector.load %arg6[%c0_8, %c0_9] : memref<8x1xf32, #tpu.memory_space<vmem>>, vector<8x1xf32>
    %cst_10 = arith.constant dense<0.000000e+00> : vector<8xf32>
    %11 = vector.multi_reduction <add>, %4, %cst_10 [1] : vector<8x256xf32> to vector<8xf32>
    %12 = vector.shape_cast %11 : vector<8xf32> to vector<8x1xf32>
    %13 = arith.addf %10, %12 : vector<8x1xf32>
    %c0_11 = arith.constant 0 : index
    %c0_12 = arith.constant 0 : index
    %14 = vector.load %arg6[%c0_11, %c0_12] : memref<8x1xf32, #tpu.memory_space<vmem>>, vector<8x1xf32>
    tpu.vector_store %arg6[%c0_11, %c0_12], %13 {strides = array<i32>} : memref<8x1xf32, #tpu.memory_space<vmem>>, vector<8x1xf32>,
    %c0_13 = arith.constant 0 : index
    %c0_14 = arith.constant 0 : index
    %15 = vector.load %arg7[%c0_13, %c0_14] : memref<8x1xf32, #tpu.memory_space<vmem>>, vector<8x1xf32>
    %16 = arith.mulf %3, %3 : vector<8x256xf32>
    %cst_15 = arith.constant dense<0.000000e+00> : vector<8xf32>
    %17 = vector.multi_reduction <add>, %16, %cst_15 [1] : vector<8x256xf32> to vector<8xf32>
    %18 = vector.shape_cast %17 : vector<8xf32> to vector<8x1xf32>
    %19 = arith.addf %15, %18 : vector<8x1xf32>
    %c0_16 = arith.constant 0 : index
    %c0_17 = arith.constant 0 : index
    %20 = vector.load %arg7[%c0_16, %c0_17] : memref<8x1xf32, #tpu.memory_space<vmem>>, vector<8x1xf32>
    tpu.vector_store %arg7[%c0_16, %c0_17], %19 {strides = array<i32>} : memref<8x1xf32, #tpu.memory_space<vmem>>, vector<8x1xf32>,
    %c0_18 = arith.constant 0 : index
    %c0_19 = arith.constant 0 : index
    %21 = vector.load %arg8[%c0_18, %c0_19] : memref<8x1xf32, #tpu.memory_space<vmem>>, vector<8x1xf32>
    %22 = arith.mulf %4, %4 : vector<8x256xf32>
    %cst_20 = arith.constant dense<0.000000e+00> : vector<8xf32>
    %23 = vector.multi_reduction <add>, %22, %cst_20 [1] : vector<8x256xf32> to vector<8xf32>
    %24 = vector.shape_cast %23 : vector<8xf32> to vector<8x1xf32>
    %25 = arith.addf %21, %24 : vector<8x1xf32>
    %c0_21 = arith.constant 0 : index
    %c0_22 = arith.constant 0 : index
    %26 = vector.load %arg8[%c0_21, %c0_22] : memref<8x1xf32, #tpu.memory_space<vmem>>, vector<8x1xf32>
    tpu.vector_store %arg8[%c0_21, %c0_22], %25 {strides = array<i32>} : memref<8x1xf32, #tpu.memory_space<vmem>>, vector<8x1xf32>,
    %c0_23 = arith.constant 0 : index
    %c0_24 = arith.constant 0 : index
    %27 = vector.load %arg9[%c0_23, %c0_24] : memref<8x1xf32, #tpu.memory_space<vmem>>, vector<8x1xf32>
    %28 = arith.mulf %3, %4 : vector<8x256xf32>
    %cst_25 = arith.constant dense<0.000000e+00> : vector<8xf32>
    %29 = vector.multi_reduction <add>, %28, %cst_25 [1] : vector<8x256xf32> to vector<8xf32>
    %30 = vector.shape_cast %29 : vector<8xf32> to vector<8x1xf32>
    %31 = arith.addf %27, %30 : vector<8x1xf32>
    %c0_26 = arith.constant 0 : index
    %c0_27 = arith.constant 0 : index
    %32 = vector.load %arg9[%c0_26, %c0_27] : memref<8x1xf32, #tpu.memory_space<vmem>>, vector<8x1xf32>
    tpu.vector_store %arg9[%c0_26, %c0_27], %31 {strides = array<i32>} : memref<8x1xf32, #tpu.memory_space<vmem>>, vector<8x1xf32>,
    %c0_i32_28 = arith.constant 0 : i32
    %33 = arith.cmpi eq, %arg1, %c0_i32_28 : i32
    %34 = arith.extui %33 : i1 to i32
    %c0_i32_29 = arith.constant 0 : i32
    %35 = arith.cmpi ne, %34, %c0_i32_29 : i32
    scf.if %35 {
      %c0_30 = arith.constant 0 : index
      %c0_31 = arith.constant 0 : index
      %36 = vector.load %arg5[%c0_30, %c0_31] : memref<8x1xf32, #tpu.memory_space<vmem>>, vector<8x1xf32>
      %c0_32 = arith.constant 0 : index
      %c0_33 = arith.constant 0 : index
      %37 = vector.load %arg6[%c0_32, %c0_33] : memref<8x1xf32, #tpu.memory_space<vmem>>, vector<8x1xf32>
      %c0_34 = arith.constant 0 : index
      %c0_35 = arith.constant 0 : index
      %38 = vector.load %arg7[%c0_34, %c0_35] : memref<8x1xf32, #tpu.memory_space<vmem>>, vector<8x1xf32>
      %c0_36 = arith.constant 0 : index
      %c0_37 = arith.constant 0 : index
      %39 = vector.load %arg8[%c0_36, %c0_37] : memref<8x1xf32, #tpu.memory_space<vmem>>, vector<8x1xf32>
      %c0_38 = arith.constant 0 : index
      %c0_39 = arith.constant 0 : index
      %40 = vector.load %arg9[%c0_38, %c0_39] : memref<8x1xf32, #tpu.memory_space<vmem>>, vector<8x1xf32>
      %41 = arith.mulf %36, %37 : vector<8x1xf32>
      %cst_40 = arith.constant 3.906250e-03 : f32
      %42 = vector.broadcast %cst_40 : f32 to vector<8x1xf32>
      %43 = arith.mulf %41, %42 : vector<8x1xf32>
      %44 = arith.subf %40, %43 : vector<8x1xf32>
      %45 = arith.mulf %36, %36 : vector<8x1xf32>
      %cst_41 = arith.constant 3.906250e-03 : f32
      %46 = vector.broadcast %cst_41 : f32 to vector<8x1xf32>
      %47 = arith.mulf %45, %46 : vector<8x1xf32>
      %48 = arith.subf %38, %47 : vector<8x1xf32>
      %cst_42 = arith.constant 0.000000e+00 : f32
      %49 = vector.broadcast %cst_42 : f32 to vector<8x1xf32>
      %50 = arith.maximumf %48, %49 : vector<8x1xf32>
      %51 = arith.mulf %37, %37 : vector<8x1xf32>
      %cst_43 = arith.constant 3.906250e-03 : f32
      %52 = vector.broadcast %cst_43 : f32 to vector<8x1xf32>
      %53 = arith.mulf %51, %52 : vector<8x1xf32>
      %54 = arith.subf %39, %53 : vector<8x1xf32>
      %cst_44 = arith.constant 0.000000e+00 : f32
      %55 = vector.broadcast %cst_44 : f32 to vector<8x1xf32>
      %56 = arith.maximumf %54, %55 : vector<8x1xf32>
      %57 = math.sqrt %50 : vector<8x1xf32>
      %58 = math.sqrt %56 : vector<8x1xf32>
      %59 = arith.mulf %57, %58 : vector<8x1xf32>
      %cst_45 = arith.constant 9.99999993E-9 : f32
      %60 = vector.broadcast %cst_45 : f32 to vector<8x1xf32>
      %61 = arith.addf %59, %60 : vector<8x1xf32>
      %62 = arith.mulf %50, %56 : vector<8x1xf32>
      %cst_46 = arith.constant 0.000000e+00 : f32
      %63 = vector.broadcast %cst_46 : f32 to vector<8x1xf32>
      %64 = arith.cmpf ogt, %62, %63 : vector<8x1xf32>
      %65 = arith.divf %44, %61 : vector<8x1xf32>
      %cst_47 = arith.constant 0.000000e+00 : f32
      %66 = vector.broadcast %cst_47 : f32 to vector<8x1xf32>
      %67 = arith.select %64, %65, %66 : vector<8x1xi1>, vector<8x1xf32>
      %68 = arith.addf %38, %39 : vector<8x1xf32>
      %cst_48 = arith.constant 2.000000e+00 : f32
      %69 = vector.broadcast %cst_48 : f32 to vector<8x1xf32>
      %70 = arith.mulf %69, %40 : vector<8x1xf32>
      %71 = arith.subf %68, %70 : vector<8x1xf32>
      %cst_49 = arith.constant 0.000000e+00 : f32
      %72 = vector.broadcast %cst_49 : f32 to vector<8x1xf32>
      %73 = arith.maximumf %71, %72 : vector<8x1xf32>
      %74 = tpu.iota {dimensions = array<i32: 1>} : vector<8x2xi32>
      %c0_i32_50 = arith.constant 0 : i32
      %75 = vector.broadcast %c0_i32_50 : i32 to vector<8x2xi32>
      %76 = arith.cmpi eq, %74, %75 : vector<8x2xi32>
      %77 = vector.shape_cast %67 : vector<8x1xf32> to vector<8x1xf32>
      %78 = vector.broadcast %77 : vector<8x1xf32> to vector<8x2xf32>
      %79 = vector.shape_cast %73 : vector<8x1xf32> to vector<8x1xf32>
      %80 = vector.broadcast %79 : vector<8x1xf32> to vector<8x2xf32>
      %81 = arith.select %76, %78, %80 : vector<8x2xi1>, vector<8x2xf32>
      %c0_51 = arith.constant 0 : index
      %c0_52 = arith.constant 0 : index
      %82 = vector.load %arg4[%c0_51, %c0_52] : memref<8x2xf32, #tpu.memory_space<vmem>>, vector<8x2xf32>
      tpu.vector_store %arg4[%c0_51, %c0_52], %81 {strides = array<i32>} : memref<8x2xf32, #tpu.memory_space<vmem>>, vector<8x2xf32>,
    } else {
    }
    return
  }
  func.func @transform_0(%arg0: i32, %arg1: i32) -> (i32, i32) {
    %c0_i32 = arith.constant 0 : i32
    return %arg0, %arg1 : i32, i32
  }
  func.func @transform_1(%arg0: i32, %arg1: i32) -> (i32, i32) {
    %c0_i32 = arith.constant 0 : i32
    return %arg0, %arg1 : i32, i32
  }
  func.func @transform_2(%arg0: i32, %arg1: i32) -> (i32, i32) {
    %c0_i32 = arith.constant 0 : i32
    %c0_i32_0 = arith.constant 0 : i32
    return %arg0, %c0_i32 : i32, i32
  }
}

</mosaic_0001>

<bundles_post_ra>
// kernel: tpu_custom_call.1
= control target key start
LH: loop header
LB: loop body
LE: loop exit
PB: predicated region body
PF: predicated region fallthrough
CT: control target
= control target key end

     0   :  { %7 = vsyncpa [#allocation8], 0  ;;  %s268_s0 = inlined_call_operand.hbm [shape: f32[8,256], index: 0, kind: input, shape index: {}]   ;;  %s269_s1 = inlined_call_operand.hbm [shape: f32[8,256], index: 1, kind: input, shape index: {}]   ;;  %s270_s2 = inlined_call_operand.vmem [shape: f32[8,2], index: 2, kind: output, shape index: {}]  }
   0x1   :  { %8 = vsyncpa [#allocation10], 0  ;;  %s212_s9 = smov [#allocation7]   ;;  %s213_s11 = smov [#allocation9]  }
   0x2   :  { %s15_s10 = sshll.u32 %s212_s9, 4  ;;  %s25_s12 = sshll.u32 %s213_s11, 4  ;;  %s16_s10 = int_to_ptr.vmem [resolvable:$true] %s15_s10  ;;  %s26_s12 = int_to_ptr.vmem [resolvable:$true] %s25_s12 }
   0x3   :  { %s164_s15 = scalar_lea.hbm %s268_s0, 256 }
   0x4   :  { %p165_p0 = scmp.ne.s32.totalorder %s268_s0, %s164_s15  ;;  %p168_p1 = scmp.lt.u32.totalorder %s164_s15, %s268_s0 }
   0x6   :  { %p170_p2 = pnand %p168_p1, %p165_p0 }
   0x8   :  { %173 = shalt.err (!%p170_p2)
}
   0x9   :  { %s174_s20 = scalar_lea.vmem %s16_s10, 256  ;;  %p179_p4 = scmp.lt.s32.totalorder %s16_s10, %s16_s10 }
   0xa   :  { %p175_p3 = scmp.ne.s32.totalorder %s16_s10, %s174_s20  ;;  %p180_p5 = scmp.lt.s32.totalorder %s174_s20, %s174_s20 }
   0xc   :  { %p181_p6 = por %p180_p5, %p179_p4 }
   0xe   :  { %p182_p7 = pnand %p181_p6, %p175_p3 }
  0x10   :  { %185 = shalt.err (!%p182_p7)
}
  0x11   :  { %18 = dma.hbm_to_vmem [thread:$0]  %s268_s0, 256, %s16_s10, [#allocation8]  }
  0x12   :  { %s186_s25 = scalar_lea.hbm %s269_s1, 256 }
  0x13   :  { %p187_p8 = scmp.ne.s32.totalorder %s269_s1, %s186_s25  ;;  %p190_p9 = scmp.lt.u32.totalorder %s186_s25, %s269_s1 }
  0x15   :  { %p192_p10 = pnand %p190_p9, %p187_p8 }
  0x17   :  { %195 = shalt.err (!%p192_p10)
}
  0x18   :  { %s196_s30 = scalar_lea.vmem %s26_s12, 256  ;;  %p201_p12 = scmp.lt.s32.totalorder %s26_s12, %s26_s12 }
  0x19   :  { %p197_p11 = scmp.ne.s32.totalorder %s26_s12, %s196_s30  ;;  %p202_p13 = scmp.lt.s32.totalorder %s196_s30, %s196_s30 }
  0x1b   :  { %p203_p0 = por %p202_p13, %p201_p12 }
  0x1d   :  { %p204_p1 = pnand %p203_p0, %p197_p11 }
  0x1f   :  { %207 = shalt.err (!%p204_p1)
}
  0x20   :  { %28 = dma.hbm_to_vmem [thread:$0]  %s269_s1, 256, %s26_s12, [#allocation10]  }
  0x21   :  { %208 = dma.done.wait [#allocation8], 256  }
  0x22   :  { %209 = vsyncadd [#allocation8], 4294967040 }
  0x23   :  { %210 = dma.done.wait [#allocation10], 256  }
  0x24   :  { %211 = vsyncadd [#allocation10], 4294967040  ;;  %vm39_vm0 = vcmask 7168   ;;  %v214_v0 = vmov 0.0   ;;  %v45_v1 = vld [vmem:[#allocation7] sm:$0xff]  ;;  %v46_v2 = vld [vmem:[#allocation7 + $0x8] sm:$0xff] }
  0x25   :  { %40 = vst.msk [vmem:[#allocation2] sm:$0xff] %vm39_vm0, %v214_v0  ;;  %41 = vst.msk [vmem:[#allocation3] sm:$0xff] %vm39_vm0, %v214_v0  ;;  %v47_v3 = vld [vmem:[#allocation9] sm:$0xff]  ;;  %v50_v4 = vadd.f32 %v46_v2, %v45_v1  ;;  %v63_v5 = vmul.f32 %v45_v1, %v45_v1  ;;  %v64_v6 = vmul.f32 %v46_v2, %v46_v2  ;;  %v48_v7 = vld [vmem:[#allocation9 + $0x8] sm:$0xff]  ;;  %v215_v16 = vmov 0  }
  0x26   :  { %42 = vst.msk [vmem:[#allocation4] sm:$0xff] %vm39_vm0, %v214_v0  ;;  %43 = vst.msk [vmem:[#allocation5] sm:$0xff] %vm39_vm0, %v214_v0  ;;  %v71_v8 = vmul.f32 %v47_v3, %v47_v3  ;;  %v72_v9 = vmul.f32 %v48_v7, %v48_v7  ;;  %v57_v11 = vadd.f32 %v48_v7, %v47_v3  ;;  %157 = vset.pattern.permute.xlu0 %v215_v16  ;;  %vm144_vm7 = vcmask 15360  }
  0x27   :  { %44 = vst.msk [vmem:[#allocation6] sm:$0xff] %vm39_vm0, %v214_v0  ;;  %51 = vadd.xlane.f32.xlu0 %v50_v4  ;;  %v65_v10 = vadd.f32 %v64_v6, %v63_v5  ;;  %v79_v12 = vmul.f32 %v47_v3, %v45_v1  ;;  %v80_v13 = vmul.f32 %v48_v7, %v46_v2  ;;  %v130_v4 = vlaneseq }
  0x28   :  { %v73_v14 = vadd.f32 %v72_v9, %v71_v8  ;;  %156 = vset.pattern.permute.xlu1 %v215_v16 }
  0x29   :  { %66 = vadd.xlane.f32.xlu1 %v65_v10  ;;  %v81_v15 = vadd.f32 %v80_v13, %v79_v12  ;;  %v131_v5 = vand.u32 127, %v130_v4 }
  0x2b   :  { %58 = vadd.xlane.f32.xlu0 %v57_v11  ;;  %vm132_vm6 = vcmp.eq.s32.totalorder %v131_v5, 0 }
  0x2c   :  { %v49_v17 = vld [vmem:[#allocation2] sm:$0xff]  ;;  %v56_v22 = vld [vmem:[#allocation3] sm:$0xff] }
  0x2d   :  { %74 = vadd.xlane.f32.xlu1 %v73_v14  ;;  %v62_v19 = vld [vmem:[#allocation4] sm:$0xff]  ;;  %v70_v25 = vld [vmem:[#allocation5] sm:$0xff] }
  0x2e   :  { %v78_v28 = vld [vmem:[#allocation6] sm:$0xff] }
  0x2f   :  { %82 = vadd.xlane.f32.xlu0 %v81_v15 }
  0xb4   :  { %v52_v18 = vpop.xlane.xlu0 %51 }
  0xb5   :  { %v53_v20 = vadd.f32 %v52_v18, %v49_v17 }
  0xb6   :  { %v67_v21 = vpop.xlane.xlu1 %66 }
  0xb7   :  { %55 = vst.msk [vmem:[#allocation2] sm:$0xff] %vm39_vm0, %v53_v20  ;;  %v68_v23 = vadd.f32 %v67_v21, %v62_v19 }
  0xb8   :  { %v59_v24 = vpop.xlane.xlu0 %58 }
  0xb9   :  { %69 = vst.msk [vmem:[#allocation4] sm:$0xff] %vm39_vm0, %v68_v23  ;;  %v60_v26 = vadd.f32 %v59_v24, %v56_v22 }
  0xba   :  { %v75_v27 = vpop.xlane.xlu1 %74 }
  0xbb   :  { %61 = vst.msk [vmem:[#allocation3] sm:$0xff] %vm39_vm0, %v60_v26  ;;  %v76_v29 = vadd.f32 %v75_v27, %v70_v25 }
  0xbc   :  { %v83_v30 = vpop.xlane.xlu0 %82 }
  0xbd   :  { %77 = vst.msk [vmem:[#allocation5] sm:$0xff] %vm39_vm0, %v76_v29  ;;  %v84_v31 = vadd.f32 %v83_v30, %v78_v28 }
  0xbe   :  { %v89_v32 = vld [vmem:[#allocation2] sm:$0xff] }
  0xbf   :  { %85 = vst.msk [vmem:[#allocation6] sm:$0xff] %vm39_vm0, %v84_v31  ;;  %v97_v33 = vmul.f32 %v89_v32, %v89_v32 }
  0xc0   :  { %v91_v34 = vld [vmem:[#allocation4] sm:$0xff] }
  0xc1   :  { %v98_v35 = vmul.f32 0.00390625, %v97_v33 }
  0xc2   :  { %v90_v36 = vld [vmem:[#allocation3] sm:$0xff] }
  0xc3   :  { %v99_v37 = vsub.f32 %v91_v34, %v98_v35  ;;  %v101_v38 = vmul.f32 %v90_v36, %v90_v36  ;;  %v94_v61 = vmul.f32 %v90_v36, %v89_v32 }
  0xc4   :  { %v92_v39 = vld [vmem:[#allocation5] sm:$0xff] }
  0xc5   :  { %v100_v40 = vmax.f32 %v99_v37, 0.0  ;;  %v102_v41 = vmul.f32 0.00390625, %v101_v38  ;;  %v126_v43 = vadd.f32 %v92_v39, %v91_v34  ;;  %v95_v62 = vmul.f32 0.00390625, %v94_v61 }
  0xc6   :  { %v93_v42 = vld [vmem:[#allocation6] sm:$0xff] }
  0xc7   :  { %v127_v44 = vmul.f32 2.0, %v93_v42  ;;  %v103_v45 = vsub.f32 %v92_v39, %v102_v41  ;;  %158 = vrsqrt.f32 %v100_v40  ;;  %vm107_vm1 = vcmp.eq.f32.partialorder %v100_v40, inf }
  0xc8   :  { %v110_v54 = vand.u32 2147483648, %v100_v40  ;;  %vm109_vm3 = vcmp.eq.f32.partialorder %v100_v40, 0.0  ;;  %v96_v0 = vsub.f32 %v93_v42, %v95_v62 }
  0xc9   :  { %v128_v46 = vsub.f32 %v126_v43, %v127_v44  ;;  %v104_v47 = vmax.f32 %v103_v45, 0.0 }
  0xcb   :  { %v129_v48 = vmax.f32 %v128_v46, 0.0  ;;  %160 = vrsqrt.f32 %v104_v47  ;;  %vm114_vm2 = vcmp.eq.f32.partialorder %v104_v47, inf  ;;  %v117_v55 = vand.u32 2147483648, %v104_v47 }
  0xcc   :  { %vm116_vm4 = vcmp.eq.f32.partialorder %v104_v47, 0.0  ;;  %v121_v63 = vmul.f32 %v104_v47, %v100_v40 }
  0xcd   :  { %140 = vperm.xlu0 %157, %v129_v48  }
  0xce   :  { %vm122_vm5 = vcmp.gt.f32.partialorder %v121_v63, 0.0 }
  0xd1   :  { %v159_v49 = vpop.eup %158 }
  0xd2   :  { %v106_v50 = vmul.f32 %v159_v49, %v100_v40 }
  0xd4   :  { %v108_v52 = vsel %vm107_vm1, %v100_v40, %v106_v50 }
  0xd5   :  { %v161_v51 = vpop.eup %160  ;;  %v111_v57 = vsel %vm109_vm3, %v110_v54, %v108_v52 }
  0xd6   :  { %v113_v53 = vmul.f32 %v161_v51, %v104_v47 }
  0xd8   :  { %v115_v56 = vsel %vm114_vm2, %v104_v47, %v113_v53 }
  0xd9   :  { %v118_v58 = vsel %vm116_vm4, %v117_v55, %v115_v56 }
  0xda   :  { %v119_v59 = vmul.f32 %v118_v58, %v111_v57 }
  0xdc   :  { %v120_v60 = vadd.f32 1e-08, %v119_v59 }
  0xde   :  { %162 = vrcp.f32 %v120_v60 }
  0xe8   :  { %v163_v1 = vpop.eup %162 }
  0xe9   :  { %v124_v2 = vmul.f32 %v163_v1, %v96_v0 }
  0xeb   :  { %v125_v3 = vsel %vm122_vm5, %v124_v2, 0.0 }
  0xec   :  { %135 = vperm.xlu1 %156, %v125_v3  }
 0x14c   :  { %v141_v6 = vpop.permute.xlu0 %140 }
 0x16b   :  { %v136_v7 = vpop.permute.xlu1 %135 }
 0x16c   :  { %v143_v8 = vsel %vm132_vm6, %v136_v7, %v141_v6 }
 0x16d   :  { %145 = vst.msk [vmem:[%s270_s2] sm:$0xff] %vm144_vm7, %v143_v8 }
 0x16e   :  { %150 = vsyncpa [#allocation8], 1 }
 0x16f   :  { %151 = vsyncpa [#allocation10], 1 }

</bundles_post_ra>
